<compile_context>
chip_gen: v6e
topology: v6e:2x2x1
jax: 0.10.0
libtpu: 0.0.40
codegen_flags: <defaults>
</compile_context>

<pallas_src>
import zlib

import numpy as np
import jax
import jax.numpy as jnp
from jax import lax
from jax.experimental import pallas as pl
from jax.experimental.pallas import tpu as pltpu

LANES = 128               # lane width of a vreg
SUBLANES = 8              # sublane depth of a vreg
UNK_IDX = 0               # ScriptVocabulary default unk index
MAX_GRIDLESS_ROWS = 8192  # 8192x128 queries = 4 MiB in + 4 MiB out -> gridless
BLOCK_ROWS = 4096         # coarse grid blocks (2 MiB/block) for huge batches


def _lookup_kernel(q_ref, vocab_ref, o_ref):
    # q_ref:     (R, 128) int32 query codes in VMEM (full (8,128) vreg tiles)
    # vocab_ref: (V,)     int32 vocab codes in SMEM (flat scalar table)
    # o_ref:     (R, 128) int32 vocab indices (lane-dense, unmasked stores)
    q = q_ref[...]
    n_vocab = vocab_ref.shape[0]

    def body(i, out):
        # Scalar SMEM read broadcast against the whole query tile: pure VPU
        # compare + select.  Vocab codes are unique, so at most one i matches
        # any query; unmatched queries keep UNK_IDX.
        return jnp.where(q == vocab_ref[i], i, out)

    o_ref[...] = lax.fori_loop(
        0, n_vocab, body, jnp.full_like(q, UNK_IDX),
        unroll=True if n_vocab <= 64 else 8)


def _build_lookup(vocab_codes, rows):
    """Build a jitted fn: (rows, 128) int32 codes -> (rows, 128) int32 indices."""
    out_shape = jax.ShapeDtypeStruct((rows, LANES), jnp.int32)
    vmem = pltpu.MemorySpace.VMEM
    smem_spec = pl.BlockSpec(memory_space=pltpu.MemorySpace.SMEM)

    if rows <= MAX_GRIDLESS_ROWS:
        # Common case: no grid at all -> no software-pipeline prologue /
        # epilogue / per-step bookkeeping; the whole array is a few KB of VMEM.
        call = pl.pallas_call(
            _lookup_kernel,
            out_shape=out_shape,
            in_specs=[pl.BlockSpec(memory_space=vmem), smem_spec],
            out_specs=pl.BlockSpec(memory_space=vmem),
        )
    else:
        # Huge batches only: coarse (4096,128) blocks (each several us of VPU
        # work) so the per-step overhead is negligible and v7x's two
        # TensorCores can usefully split the grid.
        call = pl.pallas_call(
            _lookup_kernel,
            out_shape=out_shape,
            grid=(rows // BLOCK_ROWS,),
            in_specs=[pl.BlockSpec((BLOCK_ROWS, LANES), lambda i: (i, 0)),
                      smem_spec],
            out_specs=pl.BlockSpec((BLOCK_ROWS, LANES), lambda i: (i, 0)),
            compiler_params=pltpu.CompilerParams(
                dimension_semantics=("parallel",)),
        )

    @jax.jit
    def lookup(q_codes):
        # vocab_codes captured once; no per-call upload or construction.
        return call(q_codes, vocab_codes)

    return lookup


class LabelTransformPallas:
    """JAX/Pallas re-implementation of pytext LabelTransform."""

    def __init__(self, label_names):
        self.label_names = list(label_names)
        self._hash_cache = {}
        codes = [self._hash(name) for name in self.label_names]
        # TODO(synk): an out-of-vocab query string that hash-collides with a
        # vocab code maps to that vocab index (true string equality has no TPU
        # equivalent); collisions inside the vocab itself are asserted away.
        assert len(set(codes)) == len(codes), "label hash collision in vocab"
        self._vocab_codes = jnp.asarray(np.asarray(codes, dtype=np.int32))
        self._lookup_cache = {}

    def _hash(self, s):
        h = self._hash_cache.get(s)
        if h is None:
            # crc32: deterministic, C-speed; masked non-negative so the -2
            # query-padding sentinel can never collide.
            h = zlib.crc32(s.encode("utf-8")) & 0x7FFFFFFF
            self._hash_cache[s] = h
        return h

    def _encode(self, labels):
        """Hash + pad labels into a sublane-dense (rows, 128) int32 array.

        rows is a power of two (>= 8), so the jit cache stays O(log batch) and
        every tile is a full (8,128) vreg.
        """
        n = len(labels)
        rows = max(SUBLANES, pl.next_power_of_2(pl.cdiv(n, LANES)))
        q = np.full(rows * LANES, -2, dtype=np.int32)  # -2 never matches
        q[:n] = [self._hash(s) for s in labels]
        return q.reshape(rows, LANES), n

    def _lookup_fn(self, rows):
        fn = self._lookup_cache.get(rows)
        if fn is None:
            fn = _build_lookup(self._vocab_codes, rows)
            self._lookup_cache[rows] = fn
        return fn

    def lookup_device(self, labels):
        """Raw padded (rows, 128) device result, no host readback."""
        q, _ = self._encode(labels)
        return self._lookup_fn(q.shape[0])(q)

    def __call__(self, labels):
        n = len(labels)
        if n == 0:
            return []
        q, _ = self._encode(labels)
        out = self._lookup_fn(q.shape[0])(q)
        # np.asarray performs the single blocking D2H copy; no extra
        # block_until_ready needed on this path.
        return np.asarray(out).reshape(-1)[:n].tolist()


if __name__ == "__main__":
    # Deterministic synthetic setup (no checkpoint / file IO).
    label_names = ["negative", "neutral", "positive", "unknown_class"]
    transform = LabelTransformPallas(label_names)
    idx_map = {name: i for i, name in enumerate(label_names)}

    key = jax.random.PRNGKey(0)
    key_small, key_big = jax.random.split(key)

    # Small batch (6 labels incl. one OOV): exercises the gridless (8,128)
    # kernel and the unk fallback path.
    picks = np.asarray(jax.random.randint(key_small, (5,), 0, len(label_names)))
    labels = [label_names[int(i)] for i in picks] + ["OOV_LABEL"]
    # Explicit device-side run + block (the __call__ readback syncs on its own).
    jax.block_until_ready(transform.lookup_device(labels))
    result = transform(labels)
    expected = [idx_map.get(s, UNK_IDX) for s in labels]
    assert result == expected, (result, expected)

    # Larger batch (2000 labels, >1024): exercises a bigger gridless tile
    # (rows=16) and the power-of-two row bucketing.
    picks_big = np.asarray(
        jax.random.randint(key_big, (2000,), 0, len(label_names)))
    labels_big = [label_names[int(i)] for i in picks_big]
    labels_big[7] = "ANOTHER_OOV"
    labels_big[1500] = "YET_ANOTHER_OOV"
    result_big = transform(labels_big)
    expected_big = [idx_map.get(s, UNK_IDX) for s in labels_big]
    assert result_big == expected_big, (result_big[:16], expected_big[:16])

    print("KERNEL_OK")
</pallas_src>

<mosaic_0001>
module attributes {stable_mosaic.version = 11 : i64} {
  func.func @_lookup_kernel(%arg0: memref<8x128xi32, #tpu.memory_space<vmem>>, %arg1: memref<4xi32, #tpu.memory_space<smem>>, %arg2: memref<8x128xi32, #tpu.memory_space<vmem>>) attributes {dimension_semantics = [], scalar_prefetch = 0 : i64, scratch_operands = 0 : i64, tpu.core_type = #tpu.core_type<tc>} {
    %c0 = arith.constant 0 : index
    %c0_0 = arith.constant 0 : index
    %0 = vector.load %arg0[%c0, %c0_0] : memref<8x128xi32, #tpu.memory_space<vmem>>, vector<8x128xi32>
    %c0_i32 = arith.constant 0 : i32
    %1 = vector.broadcast %c0_i32 : i32 to vector<8x128xi32>
    %c0_i32_1 = arith.constant 0 : i32
    %2 = arith.index_cast %c0_i32_1 : i32 to index
    %3 = memref.load %arg1[%2] : memref<4xi32, #tpu.memory_space<smem>>
    %4 = vector.broadcast %3 : i32 to vector<8x128xi32>
    %5 = arith.cmpi eq, %0, %4 : vector<8x128xi32>
    %6 = vector.broadcast %c0_i32_1 : i32 to vector<8x128xi32>
    %7 = arith.select %5, %6, %1 : vector<8x128xi1>, vector<8x128xi32>
    %c1_i32 = arith.constant 1 : i32
    %8 = arith.index_cast %c1_i32 : i32 to index
    %9 = memref.load %arg1[%8] : memref<4xi32, #tpu.memory_space<smem>>
    %10 = vector.broadcast %9 : i32 to vector<8x128xi32>
    %11 = arith.cmpi eq, %0, %10 : vector<8x128xi32>
    %12 = vector.broadcast %c1_i32 : i32 to vector<8x128xi32>
    %13 = arith.select %11, %12, %7 : vector<8x128xi1>, vector<8x128xi32>
    %c2_i32 = arith.constant 2 : i32
    %14 = arith.index_cast %c2_i32 : i32 to index
    %15 = memref.load %arg1[%14] : memref<4xi32, #tpu.memory_space<smem>>
    %16 = vector.broadcast %15 : i32 to vector<8x128xi32>
    %17 = arith.cmpi eq, %0, %16 : vector<8x128xi32>
    %18 = vector.broadcast %c2_i32 : i32 to vector<8x128xi32>
    %19 = arith.select %17, %18, %13 : vector<8x128xi1>, vector<8x128xi32>
    %c3_i32 = arith.constant 3 : i32
    %20 = arith.index_cast %c3_i32 : i32 to index
    %21 = memref.load %arg1[%20] : memref<4xi32, #tpu.memory_space<smem>>
    %22 = vector.broadcast %21 : i32 to vector<8x128xi32>
    %23 = arith.cmpi eq, %0, %22 : vector<8x128xi32>
    %24 = vector.broadcast %c3_i32 : i32 to vector<8x128xi32>
    %25 = arith.select %23, %24, %19 : vector<8x128xi1>, vector<8x128xi32>
    %c4_i32 = arith.constant 4 : i32
    %c0_2 = arith.constant 0 : index
    %c0_3 = arith.constant 0 : index
    %26 = vector.load %arg2[%c0_2, %c0_3] : memref<8x128xi32, #tpu.memory_space<vmem>>, vector<8x128xi32>
    tpu.vector_store %arg2[%c0_2, %c0_3], %25 {strides = array<i32>} : memref<8x128xi32, #tpu.memory_space<vmem>>, vector<8x128xi32>,
    return
  }
}

</mosaic_0001>

<bundles_post_ra>
// kernel: lookup.1
= control target key start
LH: loop header
LB: loop body
LE: loop exit
PB: predicated region body
PF: predicated region fallthrough
CT: control target
= control target key end

     0   :  { %7 = vsyncpa [#allocation3], 0  ;;  %s160_s0 = inlined_call_operand.hbm [shape: s32[8,128], index: 0, kind: input, shape index: {}]   ;;  %s161_s1 = inlined_call_operand.vmem [shape: s32[4], index: 1, kind: input, shape index: {}]   ;;  %s162_s2 = inlined_call_operand.hbm [shape: s32[8,128], index: 2, kind: output, shape index: {}]  }
   0x1   :  { %8 = vsyncpa [#allocation5], 0 }
   0x2   :  { %9 = vsyncpa [#allocation4], 0  ;;  %s26_s11 = sshll.u32 %s161_s1, 4  ;;  %s132_s12 = smov [#allocation2]   ;;  %s27_s11 = int_to_ptr.vmem [resolvable:$true] %s26_s11 }
   0x3   :  { %s16_s13 = sshll.u32 %s132_s12, 4  ;;  %s17_s13 = int_to_ptr.vmem [resolvable:$true] %s16_s13 }
   0x4   :  { %s82_s14 = scalar_lea.vmem %s17_s13, 128  ;;  %p87_p1 = scmp.lt.s32.totalorder %s17_s13, %s17_s13 }
   0x5   :  { %p83_p0 = scmp.ne.s32.totalorder %s17_s13, %s82_s14  ;;  %p88_p2 = scmp.lt.s32.totalorder %s82_s14, %s82_s14 }
   0x7   :  { %p89_p3 = por %p88_p2, %p87_p1 }
   0x9   :  { %p90_p4 = pnand %p89_p3, %p83_p0 }
   0xb   :  { %93 = shalt.err (!%p90_p4)
}
   0xc   :  { %19 = dma.hbm_to_vmem [thread:$0]  %s160_s0, 128, %s17_s13, [#allocation3]  }
   0xd   :  { %s94_s17 = scalar_lea.vmem %s27_s11, 16  ;;  %p99_p6 = scmp.lt.s32.totalorder %s27_s11, %s27_s11 }
   0xe   :  { %p95_p5 = scmp.ne.s32.totalorder %s27_s11, %s94_s17  ;;  %p100_p7 = scmp.lt.s32.totalorder %s94_s17, %s94_s17 }
  0x10   :  { %p101_p8 = por %p100_p7, %p99_p6 }
  0x12   :  { %p102_p9 = pnand %p101_p8, %p95_p5 }
  0x14   :  { %105 = shalt.err (!%p102_p9)
}
  0x15   :  { %s133_s1 = smov [#allocation6]  }
  0x16   :  { %29 = dma.vmem_to_smem %s27_s11, 16, %s133_s1, [#allocation5]  }
  0x17   :  { %126 = dma.done.wait [#allocation3], 128  }
  0x18   :  { %127 = vsyncadd [#allocation3], 4294967168 }
  0x19   :  { %128 = dma.done.wait [#allocation5], 16  }
  0x1a   :  { %129 = vsyncadd [#allocation5], 4294967280 }
  0x1b   :  { %36 = sfence }
  0x1c   :  { %s67_s18 = sld [smem:[#allocation6 + $0x1]]  ;;  %v37_v0 = vld [vmem:[#allocation2] sm:$0xff]  ;;  %s134_s0 = smov [#allocation7]   ;;  %v135_v3 = vmov 0  }
  0x1d   :  { %s68_s19 = sld [smem:[#allocation6 + $0x2]]  ;;  %s57_s21 = sshll.u32 %s134_s0, 4  ;;  %s58_s21 = int_to_ptr.vmem [resolvable:$true] %s57_s21 }
  0x1e   :  { %s69_s20 = sld [smem:[#allocation6 + $0x3]]  ;;  %s106_s22 = scalar_lea.vmem %s58_s21, 128 }
  0x1f   :  { %p107_p10 = scmp.ne.s32.totalorder %s58_s21, %s106_s22  ;;  %p111_p11 = scmp.lt.s32.totalorder %s58_s21, %s58_s21 }
  0x20   :  { %p112_p12 = scmp.lt.s32.totalorder %s106_s22, %s106_s22 }
  0x22   :  { %v39_v1 = vstv %s67_s18  ;;  %p113_p13 = por %p112_p12, %p111_p11 }
  0x23   :  { %vm40_vm0 = vcmp.eq.s32.totalorder %v37_v0, %v39_v1  ;;  %v43_v2 = vstv %s68_s19 }
  0x24   :  { %v41_v4 = vsel %vm40_vm0, 1, %v135_v3  ;;  %vm44_vm1 = vcmp.eq.s32.totalorder %v37_v0, %v43_v2  ;;  %v47_v5 = vstv %s69_s20  ;;  %p114_p0 = pnand %p113_p13, %p107_p10 }
  0x25   :  { %v45_v6 = vsel %vm44_vm1, 2, %v41_v4  ;;  %vm48_vm2 = vcmp.eq.s32.totalorder %v37_v0, %v47_v5 }
  0x26   :  { %v49_v7 = vsel %vm48_vm2, 3, %v45_v6 }
  0x27   :  { %50 = vst [vmem:[#allocation7] sm:$0xff] %v49_v7 }
  0x28   :  { %117 = shalt.err (!%p114_p0)
}
  0x29   :  { %60 = dma.vmem_to_hbm [thread:$0]  %s58_s21, 128, %s162_s2, [#allocation4]  }
  0x2a   :  { %130 = dma.done.wait [#allocation4], 128  }
  0x2b   :  { %131 = vsyncadd [#allocation4], 4294967168 }
  0x2c   :  { %64 = vsyncpa [#allocation3], 1 }
  0x2d   :  { %65 = vsyncpa [#allocation4], 1 }
  0x2e   :  { %66 = vsyncpa [#allocation5], 1 }

</bundles_post_ra>
